<compile_context>
chip_gen: v7x
topology: tpu7x:2x2x1
jax: 0.10.0
libtpu: 0.0.40
codegen_flags: <defaults>
</compile_context>

<pallas_src>
import functools

import jax
import jax.numpy as jnp
from jax.experimental import pallas as pl
from jax.experimental.pallas import tpu as pltpu


# ----------------------------------------------------------------------------
# Pallas kernel: per-prior confidence loss + tile-reduced positive SmoothL1
# ----------------------------------------------------------------------------
def _multibox_loss_kernel(a_ref, b_ref, lc_ref, lsum_ref, *, num_classes,
                          n_valid):
    # a_ref:    (C+1, T) slab: rows [0, C) class logits, row C = matched class
    #           id (0 == background), stored in the logits' native dtype.
    # b_ref:    (8, T) slab: rows [0,4) predicted offsets, rows [4,8) GT offsets.
    # lc_ref:   (1, T) f32 out: per-prior logsumexp(conf) - conf[gt].
    # lsum_ref: (1, 128) f32 out: this tile's partial sum of the positive-
    #           masked SmoothL1 loc loss (broadcast across 128 lanes).
    t = a_ref.shape[-1]
    a = a_ref[...].astype(jnp.float32)                        # (C+1, T)
    conf = a[:num_classes]                                    # (C, T)
    tgt = a[num_classes:num_classes + 1].astype(jnp.int32)    # (1, T)

    # Confidence loss: log_sum_exp(conf) - conf[gt]  (class axis = sublanes).
    m = jnp.max(conf, axis=0, keepdims=True)                  # (1, T)
    lse = jnp.log(jnp.sum(jnp.exp(conf - m), axis=0, keepdims=True)) + m
    cls_ids = jax.lax.broadcasted_iota(jnp.int32, conf.shape, 0)
    picked = jnp.sum(jnp.where(cls_ids == tgt, conf, 0.0),
                     axis=0, keepdims=True)
    lc_ref[...] = lse - picked                                # lane-dense store

    # SmoothL1 over the 4 offsets, positives only, reduced to a tile scalar.
    b = b_ref[...].astype(jnp.float32)                        # (8, T)
    d = b[:4] - b[4:8]
    ad = jnp.abs(d)
    sl1 = jnp.where(ad < 1.0, 0.5 * d * d, ad - 0.5)
    ll = jnp.sum(sl1, axis=0, keepdims=True)                  # (1, T)

    # Mask: positive prior AND lane inside the real array (ragged last block).
    lane = (jax.lax.broadcasted_iota(jnp.int32, (1, t), 1)
            + pl.program_id(0) * t)
    valid = jnp.logical_and(tgt > 0, lane < n_valid)
    # jnp.where (select), NOT multiply: -inf/NaN offsets on background priors
    # (log of degenerate/padded GT boxes) must not poison the sum.
    tile_sum = jnp.sum(jnp.where(valid, ll, 0.0))
    lsum_ref[...] = jnp.broadcast_to(tile_sum, (1, 128)).astype(jnp.float32)


def _per_prior_losses_pallas(slab_a, slab_b, *, tile_n=8192):
    ca, n = slab_a.shape
    num_classes = ca - 1

    # Tile choice: as large as possible (default 8192 lanes, multiple of 512)
    # so the ~0.35us fixed per-grid-step cost is amortized; small problems
    # collapse to one full-array block (no 128-divisibility requirement when
    # block == full dim); mid-size problems get exactly 2 steps so both v7x
    # TensorCores stay busy. VMEM stays ~2 MiB double-buffered at 8192 lanes.
    if n <= tile_n:
        t = n
    elif n <= 2 * tile_n:
        t = ((pl.cdiv(n, 2) + 511) // 512) * 512
    else:
        t = tile_n
    g = pl.cdiv(n, t)

    kernel = functools.partial(_multibox_loss_kernel,
                               num_classes=num_classes, n_valid=n)
    lc, lsum = pl.pallas_call(
        kernel,
        out_shape=(jax.ShapeDtypeStruct((1, n), jnp.float32),
                   jax.ShapeDtypeStruct((1, g * 128), jnp.float32)),
        grid=(g,),
        in_specs=[
            pl.BlockSpec((ca, t), lambda i: (0, i)),
            pl.BlockSpec((8, t), lambda i: (0, i)),
        ],
        out_specs=(
            pl.BlockSpec((1, t), lambda i: (0, i)),
            pl.BlockSpec((1, 128), lambda i: (0, i)),
        ),
        compiler_params=pltpu.CompilerParams(
            dimension_semantics=("parallel",)),
    )(slab_a, slab_b)

    loss_l_sum = jnp.sum(lsum.reshape(g, 128)[:, 0])
    return lc[0], loss_l_sum


# ----------------------------------------------------------------------------
# JAX glue: SSD matching / encoding (data-dependent; small per-image problem)
# ----------------------------------------------------------------------------
def _point_form(boxes):
    return jnp.concatenate([boxes[:, :2] - boxes[:, 2:] / 2.0,
                            boxes[:, :2] + boxes[:, 2:] / 2.0], axis=1)


def _jaccard(box_a, box_b):
    max_xy = jnp.minimum(box_a[:, None, 2:], box_b[None, :, 2:])
    min_xy = jnp.maximum(box_a[:, None, :2], box_b[None, :, :2])
    inter_wh = jnp.clip(max_xy - min_xy, 0.0)
    inter = inter_wh[..., 0] * inter_wh[..., 1]
    area_a = ((box_a[:, 2] - box_a[:, 0]) * (box_a[:, 3] - box_a[:, 1]))[:, None]
    area_b = ((box_b[:, 2] - box_b[:, 0]) * (box_b[:, 3] - box_b[:, 1]))[None, :]
    return inter / (area_a + area_b - inter)


def _encode(matched, priors, variances):
    g_cxcy = (matched[:, :2] + matched[:, 2:]) / 2.0 - priors[:, :2]
    g_cxcy = g_cxcy / (variances[0] * priors[:, 2:])
    g_wh = (matched[:, 2:] - matched[:, :2]) / priors[:, 2:]
    g_wh = jnp.log(g_wh) / variances[1]
    return jnp.concatenate([g_cxcy, g_wh], axis=1)


def _match_single(threshold, truths, priors, variances, labels):
    overlaps = _jaccard(truths, _point_form(priors))           # [nobj, P]
    best_prior_idx = jnp.argmax(overlaps, axis=1)              # [nobj]
    best_truth_overlap = jnp.max(overlaps, axis=0)             # [P]
    best_truth_idx = jnp.argmax(overlaps, axis=0)              # [P]
    best_truth_overlap = best_truth_overlap.at[best_prior_idx].set(2.0)
    # NOTE: duplicate best_prior_idx winners are unspecified-order (vs the
    # sequential PyTorch loop); usually benign.
    best_truth_idx = best_truth_idx.at[best_prior_idx].set(
        jnp.arange(truths.shape[0]))
    matches = truths[best_truth_idx]                           # [P, 4]
    conf = labels[best_truth_idx].astype(jnp.int32)            # [P]
    conf = jnp.where(best_truth_overlap < threshold, 0, conf)
    loc = _encode(matches, priors, variances)
    return loc, conf


# ----------------------------------------------------------------------------
# MultiBoxLoss forward
# ----------------------------------------------------------------------------
@functools.partial(jax.jit, static_argnames=("num_classes", "negpos_ratio"))
def multibox_loss(loc_data, conf_data, priors, targets, *, num_classes,
                  threshold=0.5, negpos_ratio=3, variances=(0.1, 0.2)):
    b, p, c = conf_data.shape
    assert c == num_classes
    priors = priors[:p, :]

    truths = targets[:, :, :4]
    labels = targets[:, :, 4]
    loc_t, conf_t = jax.vmap(
        lambda tr, la: _match_single(threshold, tr, priors, variances, la)
    )(truths, labels)                                          # [B,P,4], [B,P]

    n = b * p

    def to_rows(x):                                            # (B,P,K)->(K,N)
        return jnp.transpose(x, (2, 0, 1)).reshape(x.shape[-1], n)

    # Packed, lane-dense input slabs (priors on the lane axis).
    # TODO(synk): the conf relayout below would ideally vanish by having the
    # SSD head emit class-major (C, B*P) logits (or via input fusion); here it
    # is at least fused with the slab-packing pass and kept in the logits'
    # native dtype (feed bf16 conf on v5e to halve the dominant HBM stream).
    # NOTE: labels must stay exact in conf_data.dtype (true for <=256 classes
    # even in bf16).
    slab_a = jnp.concatenate(
        [to_rows(conf_data),
         conf_t.reshape(1, n).astype(conf_data.dtype)], axis=0)      # (C+1, N)
    slab_b = jnp.concatenate(
        [to_rows(loc_data).astype(jnp.float32),
         to_rows(loc_t).astype(jnp.float32)], axis=0)                # (8, N)

    lc_flat, loss_l_sum = _per_prior_losses_pallas(slab_a, slab_b)
    lc = lc_flat.reshape(b, p)                                 # per-prior CE

    pos = conf_t > 0                                           # [B, P]
    num_pos = jnp.sum(pos.astype(jnp.int32), axis=1, keepdims=True)   # (B,1)
    n_total = jnp.maximum(jnp.sum(num_pos).astype(jnp.float32), 1.0)

    # Hard-negative mining: one value sort + k-th-value threshold replaces the
    # double argsort rank. Exact except for exact float ties at the threshold
    # (the original resolves those in unspecified sort order anyway).
    loss_c_mine = jnp.where(pos, 0.0, lc)
    num_neg = jnp.minimum(negpos_ratio * num_pos, p - 1)               # (B,1)
    sorted_desc = -jnp.sort(-loss_c_mine, axis=1)                      # (B,P)
    kth = jnp.take_along_axis(sorted_desc, num_neg, axis=1)            # (B,1)
    neg = loss_c_mine > kth

    sel = jnp.logical_or(pos, neg)
    loss_l = loss_l_sum / n_total
    loss_c = jnp.sum(jnp.where(sel, lc, 0.0)) / n_total
    return loss_l, loss_c


# ----------------------------------------------------------------------------
# Demo
# ----------------------------------------------------------------------------
if __name__ == "__main__":
    key = jax.random.PRNGKey(0)
    B, P, C, NOBJ = 2, 256, 8, 3

    k1, k2, k3, k4, k5, k6 = jax.random.split(key, 6)

    # Predictions.
    loc_data = jax.random.normal(k1, (B, P, 4), dtype=jnp.float32) * 0.1
    conf_data = jax.random.normal(k2, (B, P, C), dtype=jnp.float32)

    # Priors in center-size form.
    cxcy = jax.random.uniform(k3, (P, 2), minval=0.1, maxval=0.9)
    wh = jax.random.uniform(k4, (P, 2), minval=0.05, maxval=0.3)
    priors = jnp.concatenate([cxcy, wh], axis=1).astype(jnp.float32)

    # Ground-truth targets: corner-form boxes + labels in [1, C-1].
    xy1 = jax.random.uniform(k5, (B, NOBJ, 2), minval=0.05, maxval=0.55)
    wh_t = jax.random.uniform(k6, (B, NOBJ, 2), minval=0.1, maxval=0.35)
    boxes = jnp.concatenate([xy1, xy1 + wh_t], axis=-1)
    labels = jax.random.randint(jax.random.PRNGKey(7), (B, NOBJ, 1), 1, C).astype(jnp.float32)
    targets = jnp.concatenate([boxes, labels], axis=-1).astype(jnp.float32)

    loss_l, loss_c = multibox_loss(loc_data, conf_data, priors, targets,
                                   num_classes=C, threshold=0.5,
                                   negpos_ratio=3, variances=(0.1, 0.2))
    loss_l = jax.block_until_ready(loss_l)
    loss_c = jax.block_until_ready(loss_c)
    assert jnp.isfinite(loss_l) and jnp.isfinite(loss_c)
    print("KERNEL_OK")
</pallas_src>

<mosaic_0001>
module attributes {stable_mosaic.version = 11 : i64} {
  func.func @_multibox_loss_kernel(%arg0: i32, %arg1: memref<9x512xf32, #tpu.memory_space<vmem>>, %arg2: memref<8x512xf32, #tpu.memory_space<vmem>>, %arg3: memref<1x512xf32, #tpu.memory_space<vmem>>, %arg4: memref<1x128xf32, #tpu.memory_space<vmem>>) attributes {dimension_semantics = [#tpu.dimension_semantics<parallel>], iteration_bounds = array<i64: 1>, scalar_prefetch = 0 : i64, scratch_operands = 0 : i64, tpu.core_type = #tpu.core_type<tc>, window_params = [{transform_indices = @transform_0, window_bounds = array<i64: 9, 512>}, {transform_indices = @transform_1, window_bounds = array<i64: 8, 512>}, {transform_indices = @transform_2, window_bounds = array<i64: 1, 512>}, {transform_indices = @transform_3, window_bounds = array<i64: 1, 128>}]} {
    %c0 = arith.constant 0 : index
    %c0_0 = arith.constant 0 : index
    %0 = vector.load %arg1[%c0, %c0_0] : memref<9x512xf32, #tpu.memory_space<vmem>>, vector<9x512xf32>
    %1 = vector.extract_strided_slice %0 {offsets = [0, 0], sizes = [8, 512], strides = [1, 1]} : vector<9x512xf32> to vector<8x512xf32>
    %2 = vector.extract_strided_slice %0 {offsets = [8, 0], sizes = [1, 512], strides = [1, 1]} : vector<9x512xf32> to vector<1x512xf32>
    %3 = arith.fptosi %2 : vector<1x512xf32> to vector<1x512xi32>
    %cst = arith.constant dense<0xFF800000> : vector<512xf32>
    %4 = vector.multi_reduction <maximumf>, %1, %cst [0] : vector<8x512xf32> to vector<512xf32>
    %5 = vector.shape_cast %4 : vector<512xf32> to vector<1x512xf32>
    %6 = vector.broadcast %5 : vector<1x512xf32> to vector<8x512xf32>
    %7 = arith.subf %1, %6 : vector<8x512xf32>
    %8 = math.exp %7 : vector<8x512xf32>
    %cst_1 = arith.constant dense<0.000000e+00> : vector<512xf32>
    %9 = vector.multi_reduction <add>, %8, %cst_1 [0] : vector<8x512xf32> to vector<512xf32>
    %10 = vector.shape_cast %9 : vector<512xf32> to vector<1x512xf32>
    %11 = math.log %10 : vector<1x512xf32>
    %12 = arith.addf %11, %5 : vector<1x512xf32>
    %13 = tpu.iota {dimensions = array<i32: 0>} : vector<8x512xi32>
    %14 = vector.broadcast %3 : vector<1x512xi32> to vector<8x512xi32>
    %15 = arith.cmpi eq, %13, %14 : vector<8x512xi32>
    %cst_2 = arith.constant 0.000000e+00 : f32
    %16 = vector.broadcast %cst_2 : f32 to vector<8x512xf32>
    %17 = arith.select %15, %1, %16 : vector<8x512xi1>, vector<8x512xf32>
    %cst_3 = arith.constant dense<0.000000e+00> : vector<512xf32>
    %18 = vector.multi_reduction <add>, %17, %cst_3 [0] : vector<8x512xf32> to vector<512xf32>
    %19 = vector.shape_cast %18 : vector<512xf32> to vector<1x512xf32>
    %20 = arith.subf %12, %19 : vector<1x512xf32>
    %c0_4 = arith.constant 0 : index
    %c0_5 = arith.constant 0 : index
    %21 = vector.load %arg3[%c0_4, %c0_5] : memref<1x512xf32, #tpu.memory_space<vmem>>, vector<1x512xf32>
    tpu.vector_store %arg3[%c0_4, %c0_5], %20 {strides = array<i32>} : memref<1x512xf32, #tpu.memory_space<vmem>>, vector<1x512xf32>,
    %c0_6 = arith.constant 0 : index
    %c0_7 = arith.constant 0 : index
    %22 = vector.load %arg2[%c0_6, %c0_7] : memref<8x512xf32, #tpu.memory_space<vmem>>, vector<8x512xf32>
    %23 = vector.extract_strided_slice %22 {offsets = [0, 0], sizes = [4, 512], strides = [1, 1]} : vector<8x512xf32> to vector<4x512xf32>
    %24 = vector.extract_strided_slice %22 {offsets = [4, 0], sizes = [4, 512], strides = [1, 1]} : vector<8x512xf32> to vector<4x512xf32>
    %25 = arith.subf %23, %24 : vector<4x512xf32>
    %26 = math.absf %25 : vector<4x512xf32>
    %cst_8 = arith.constant 1.000000e+00 : f32
    %27 = vector.broadcast %cst_8 : f32 to vector<4x512xf32>
    %28 = arith.cmpf olt, %26, %27 : vector<4x512xf32>
    %cst_9 = arith.constant 5.000000e-01 : f32
    %29 = vector.broadcast %cst_9 : f32 to vector<4x512xf32>
    %30 = arith.mulf %29, %25 : vector<4x512xf32>
    %31 = arith.mulf %30, %25 : vector<4x512xf32>
    %cst_10 = arith.constant 5.000000e-01 : f32
    %32 = vector.broadcast %cst_10 : f32 to vector<4x512xf32>
    %33 = arith.subf %26, %32 : vector<4x512xf32>
    %34 = arith.select %28, %31, %33 : vector<4x512xi1>, vector<4x512xf32>
    %cst_11 = arith.constant dense<0.000000e+00> : vector<512xf32>
    %35 = vector.multi_reduction <add>, %34, %cst_11 [0] : vector<4x512xf32> to vector<512xf32>
    %36 = vector.shape_cast %35 : vector<512xf32> to vector<1x512xf32>
    %37 = tpu.iota {dimensions = array<i32: 1>} : vector<1x512xi32>
    %c512_i32 = arith.constant 512 : i32
    %38 = arith.muli %arg0, %c512_i32 : i32
    %39 = vector.broadcast %38 : i32 to vector<1x512xi32>
    %40 = arith.addi %37, %39 : vector<1x512xi32>
    %c0_i32 = arith.constant 0 : i32
    %41 = vector.broadcast %c0_i32 : i32 to vector<1x512xi32>
    %42 = arith.cmpi sgt, %3, %41 : vector<1x512xi32>
    %c512_i32_12 = arith.constant 512 : i32
    %43 = vector.broadcast %c512_i32_12 : i32 to vector<1x512xi32>
    %44 = arith.cmpi slt, %40, %43 : vector<1x512xi32>
    %45 = arith.andi %42, %44 : vector<1x512xi1>
    %cst_13 = arith.constant 0.000000e+00 : f32
    %46 = vector.broadcast %cst_13 : f32 to vector<1x512xf32>
    %47 = arith.select %45, %36, %46 : vector<1x512xi1>, vector<1x512xf32>
    %48 = vector.shape_cast %47 : vector<1x512xf32> to vector<1x1x512xf32>
    %cst_14 = arith.constant dense<0.000000e+00> : vector<1xf32>
    %49 = vector.multi_reduction <add>, %48, %cst_14 [1, 2] : vector<1x1x512xf32> to vector<1xf32>
    %50 = vector.shape_cast %49 : vector<1xf32> to vector<1x1x1xf32>
    %51 = vector.extract %50[0, 0, 0] : f32 from vector<1x1x1xf32>
    %52 = vector.broadcast %51 : f32 to vector<1x128xf32>
    %c0_15 = arith.constant 0 : index
    %c0_16 = arith.constant 0 : index
    %53 = vector.load %arg4[%c0_15, %c0_16] : memref<1x128xf32, #tpu.memory_space<vmem>>, vector<1x128xf32>
    tpu.vector_store %arg4[%c0_15, %c0_16], %52 {strides = array<i32>} : memref<1x128xf32, #tpu.memory_space<vmem>>, vector<1x128xf32>,
    return
  }
  func.func @transform_0(%arg0: i32) -> (i32, i32) {
    %c0_i32 = arith.constant 0 : i32
    %c0_i32_0 = arith.constant 0 : i32
    return %c0_i32, %arg0 : i32, i32
  }
  func.func @transform_1(%arg0: i32) -> (i32, i32) {
    %c0_i32 = arith.constant 0 : i32
    %c0_i32_0 = arith.constant 0 : i32
    return %c0_i32, %arg0 : i32, i32
  }
  func.func @transform_2(%arg0: i32) -> (i32, i32) {
    %c0_i32 = arith.constant 0 : i32
    %c0_i32_0 = arith.constant 0 : i32
    return %c0_i32, %arg0 : i32, i32
  }
  func.func @transform_3(%arg0: i32) -> (i32, i32) {
    %c0_i32 = arith.constant 0 : i32
    %c0_i32_0 = arith.constant 0 : i32
    return %c0_i32, %arg0 : i32, i32
  }
}

</mosaic_0001>

<bundles_post_ra>
// kernel: squeeze.25
= control target key start
LH: loop header
LB: loop body
LE: loop exit
PB: predicated region body
PF: predicated region fallthrough
CT: control target
= control target key end

     0   :  { %s41_s0 = inlined_call_operand.vmem [shape: f32[512], index: 0, kind: input, shape index: {}]   ;;  %s42_s1 = inlined_call_operand.vmem [shape: f32[2,256], index: 1, kind: output, shape index: {}]  }
   0x1   :  { %v4_v0 = vld [vmem:[%s41_s0] sm:$0xf] }
   0x2   :  { %5 = vst [vmem:[#allocation1] sm:$0xf] %v4_v0 }
   0x9   :  { %v6_v1 = vld [vmem:[#allocation1] sm:$0xf]  }
   0xa   :  { %7 = vst [vmem:[#allocation0] ss:$8 sm:$0x3] %v6_v1   ;;  %9 = vst [vmem:[#allocation0 - $0xf] ss:$8 sm:$0xc] %v6_v1  }
  0x11   :  { %v13_v2 = vld [vmem:[#allocation0] sm:$0x3]  ;;  %v17_v3 = vld [vmem:[#allocation0 + $0x8] sm:$0x3] }
  0x12   :  { %15 = vst [vmem:[%s42_s1] sm:$0x3] %v13_v2  ;;  %21 = vst [vmem:[%s42_s1 + $0x2] sm:$0x3] %v17_v3 }

// kernel: multibox_loss.1
= control target key start
LH: loop header
LB: loop body
LE: loop exit
PB: predicated region body
PF: predicated region fallthrough
CT: control target
= control target key end

     0   :  { %v97_v7 = vlaneseq  ;;  %vm229_vm4 = vcmask 1043456   ;;  %vm285_vm9 = vcmask 1040384   ;;  %s526_s0 = inlined_call_operand.vmem [shape: f32[9,512], index: 0, kind: input, shape index: {}]   ;;  %s527_s1 = inlined_call_operand.vmem [shape: f32[8,512], index: 1, kind: input, shape index: {}]   ;;  %s528_s2 = inlined_call_operand.vmem [shape: f32[1,512], index: 2, kind: output, shape index: {0}]   ;;  %s529_s3 = inlined_call_operand.vmem [shape: f32[1,128], index: 3, kind: output, shape index: {1}]  }
   0x1   :  { %v367_v0 = vld [vmem:[%s526_s0] sm:$0xff]  ;;  %v372_v1 = vld [vmem:[%s526_s0 + $0x8] sm:$0xff]  ;;  %v377_v2 = vld [vmem:[%s526_s0 + $0x10] sm:$0xff] }
   0x2   :  { %v382_v3 = vld [vmem:[%s526_s0 + $0x18] sm:$0xff]  ;;  %v17_v4 = vld [vmem:[%s526_s0 + $0x20] sm:$0x1]  ;;  %v18_v5 = vld [vmem:[%s526_s0 + $0x28] sm:$0x1]  ;;  %v25_v6 = vrot.slane %v367_v0, 4 }
   0x3   :  { %v19_v8 = vld [vmem:[%s526_s0 + $0x30] sm:$0x1]  ;;  %v20_v9 = vld [vmem:[%s526_s0 + $0x38] sm:$0x1]  ;;  %v316_v10 = vtrunc.f32 %v17_v4  ;;  %v318_v11 = vtrunc.f32 %v18_v5  ;;  %v31_v12 = vrot.slane %v372_v1, 4  ;;  %v37_v13 = vrot.slane %v377_v2, 4 }
   0x4   :  { %v320_v14 = vtrunc.f32 %v19_v8  ;;  %v322_v15 = vtrunc.f32 %v20_v9  ;;  %v26_v16 = vmax.f32 %v367_v0, %v25_v6  ;;  %v43_v17 = vrot.slane %v382_v3, 4  ;;  %v185_v23 = vld [vmem:[%s527_s1] sm:$0xff]  ;;  %v186_v28 = vld [vmem:[%s527_s1 + $0x8] sm:$0xff]  ;;  %v187_v29 = vld [vmem:[%s527_s1 + $0x10] sm:$0xff] }
   0x5   :  { %v32_v18 = vmax.f32 %v372_v1, %v31_v12  ;;  %v38_v19 = vmax.f32 %v377_v2, %v37_v13  ;;  %v403_v20 = vcvt.f32.s32 %v316_v10  ;;  %v409_v24 = vcvt.f32.s32 %v318_v11  ;;  %v188_v62 = vld [vmem:[%s527_s1 + $0x18] sm:$0xff] }
   0x6   :  { %v27_v21 = vrot.slane %v26_v16, 2  ;;  %v44_v22 = vmax.f32 %v382_v3, %v43_v17  ;;  %v412_v27 = vshrl.u32 %v97_v7, 7  ;;  %v420_v30 = vcvt.f32.s32 %v320_v14 }
   0x7   :  { %v33_v25 = vrot.slane %v32_v18, 2  ;;  %v39_v26 = vrot.slane %v38_v19, 2  ;;  %v422_v31 = vcvt.f32.s32 %v322_v15  ;;  %v193_v37 = vrot.slane %v185_v23, 4 }
   0x8   :  { %v28_v32 = vmax.f32 %v26_v16, %v27_v21  ;;  %v45_v33 = vrot.slane %v44_v22, 2  ;;  %v101_v36 = vsub.s32 0, %v412_v27  ;;  %v194_v40 = vrot.slane %v186_v28, 4 }
   0x9   :  { %v34_v34 = vmax.f32 %v32_v18, %v33_v25  ;;  %v40_v35 = vmax.f32 %v38_v19, %v39_v26  ;;  %v195_v41 = vrot.slane %v187_v29, 4  ;;  %v196_v10 = vrot.slane %v188_v62, 4 }
   0xa   :  { %v29_v38 = vrot.slane %v28_v32, 1  ;;  %v46_v39 = vmax.f32 %v44_v22, %v45_v33  ;;  %v102_v44 = vrot.slane %v403_v20, %v101_v36  ;;  %v106_v45 = vrot.slane %v409_v24, %v101_v36 }
   0xb   :  { %v35_v42 = vrot.slane %v34_v34, 1  ;;  %v41_v43 = vrot.slane %v40_v35, 1  ;;  %v110_v48 = vrot.slane %v420_v30, %v101_v36  ;;  %v114_v49 = vrot.slane %v422_v31, %v101_v36 }
   0xc   :  { %v427_v46 = vmax.f32 %v28_v32, %v29_v38  ;;  %v47_v47 = vrot.slane %v46_v39, 1  ;;  %vm115_vm0 = vcmp.eq.s32.totalorder %v412_v27, %v102_v44  ;;  %vm116_vm1 = vcmp.eq.s32.totalorder %v412_v27, %v106_v45 }
   0xd   :  { %v431_v50 = vmax.f32 %v34_v34, %v35_v42  ;;  %v433_v51 = vmax.f32 %v40_v35, %v41_v43  ;;  %vm117_vm2 = vcmp.eq.s32.totalorder %v412_v27, %v110_v48  ;;  %vm118_vm3 = vcmp.eq.s32.totalorder %v412_v27, %v114_v49 }
   0xe   :  { %v437_v52 = vmax.f32 %v46_v39, %v47_v47  ;;  %v49_v53 = vsub.f32 %v367_v0, %v427_v46  ;;  %v119_v56 = vsel %vm115_vm0, %v367_v0, 0.0  ;;  %v120_v57 = vsel %vm116_vm1, %v372_v1, 0.0 }
   0xf   :  { %v50_v54 = vsub.f32 %v372_v1, %v431_v50  ;;  %v51_v55 = vsub.f32 %v377_v2, %v433_v51  ;;  %v121_v60 = vsel %vm117_vm2, %v377_v2, 0.0  ;;  %v122_v61 = vsel %vm118_vm3, %v382_v3, 0.0 }
  0x10   :  { %v52_v58 = vsub.f32 %v382_v3, %v437_v52  ;;  %v53_v59 = vmul.f32 1.442695, %v49_v53  ;;  %v123_v5 = vrot.slane %v119_v56, 4  ;;  %v129_v6 = vrot.slane %v120_v57, 4 }
  0x11   :  { %v55_v63 = vmul.f32 1.442695, %v50_v54  ;;  %v57_v4 = vmul.f32 1.442695, %v51_v55  ;;  %v135_v8 = vrot.slane %v121_v60, 4  ;;  %v141_v1 = vrot.slane %v122_v61, 4 }
  0x12   :  { %327 = vpow2.f32 %v53_v59  ;;  %v59_v0 = vmul.f32 1.442695, %v52_v58  ;;  %v124_v9 = vadd.f32 %v123_v5, %v119_v56  ;;  %v201_v11 = vsub.f32 %v185_v23, %v193_v37 }
  0x13   :  { %329 = vpow2.f32 %v55_v63  ;;  %v456_v2 = vadd.f32 %v129_v6, %v120_v57  ;;  %v458_v3 = vadd.f32 %v135_v8, %v121_v60  ;;  %v202_v12 = vsub.f32 %v186_v28, %v194_v40 }
  0x14   :  { %331 = vpow2.f32 %v57_v4  ;;  %v125_v13 = vrot.slane %v124_v9, 2  ;;  %v460_v14 = vadd.f32 %v141_v1, %v122_v61  ;;  %v203_v15 = vsub.f32 %v187_v29, %v195_v41 }
  0x15   :  { %333 = vpow2.f32 %v59_v0  ;;  %v204_v16 = vsub.f32 %v188_v62, %v196_v10  ;;  %v205_v17 = vand.u32 2147483647, %v201_v11  ;;  %v206_v18 = vand.u32 2147483647, %v202_v12 }
  0x16   :  { %v207_v19 = vand.u32 2147483647, %v203_v15  ;;  %v462_v22 = vadd.f32 %v125_v13, %v124_v9  ;;  %v131_v23 = vrot.slane %v456_v2, 2  ;;  %v137_v25 = vrot.slane %v458_v3, 2 }
  0x17   :  { %v208_v21 = vand.u32 2147483647, %v204_v16  ;;  %v143_v26 = vrot.slane %v460_v14, 2  ;;  %vm467_vm5 = vcmp.lt.f32.partialorder %v205_v17, 1.0  ;;  %vm471_vm6 = vcmp.lt.f32.partialorder %v206_v18, 1.0 }
  0x18   :  { %v213_v32 = vmul.f32 0.5, %v201_v11  ;;  %v214_v33 = vmul.f32 0.5, %v202_v12  ;;  %vm475_vm7 = vcmp.lt.f32.partialorder %v207_v19, 1.0  ;;  %v215_v37 = vmul.f32 0.5, %v203_v15 }
  0x19   :  { %vm479_vm8 = vcmp.lt.f32.partialorder %v208_v21, 1.0  ;;  %v216_v38 = vmul.f32 0.5, %v204_v16  ;;  %v312_v43 = vadd.f32 -0.5, %v205_v17  ;;  %v313_v49 = vadd.f32 -0.5, %v206_v18 }
  0x1a   :  { %v217_v41 = vmul.f32 %v213_v32, %v201_v11  ;;  %v218_v42 = vmul.f32 %v214_v33, %v202_v12  ;;  %v219_v47 = vmul.f32 %v215_v37, %v203_v15  ;;  %v314_v56 = vadd.f32 -0.5, %v207_v19 }
  0x1b   :  { %v220_v48 = vmul.f32 %v216_v38, %v204_v16  ;;  %v315_v57 = vadd.f32 -0.5, %v208_v21  ;;  %vm269_vm10 = vcmp.gt.s32.totalorder %v403_v20, 0  ;;  %vm270_vm11 = vcmp.gt.s32.totalorder %v409_v24, 0 }
  0x1c   :  { %v328_v34 = vpop.eup %327  ;;  %v225_v60 = vsel %vm467_vm5, %v217_v41, %v312_v43  ;;  %v226_v61 = vsel %vm471_vm6, %v218_v42, %v313_v49  ;;  %v227_v4 = vsel %vm475_vm7, %v219_v47, %v314_v56  ;;  %v144_v20 = vadd.f32 %v143_v26, %v460_v14 }
  0x1d   :  { %v330_v39 = vpop.eup %329  ;;  %v61_v40 = vrot.slane %v328_v34, 4  ;;  %v228_v5 = vsel %vm479_vm8, %v220_v48, %v315_v57  ;;  %v230_v8 = vsel %vm229_vm4, %v225_v60, 0.0  ;;  %v237_v1 = vsel %vm229_vm4, %v226_v61, 0.0 }
  0x1e   :  { %v332_v44 = vpop.eup %331  ;;  %v67_v45 = vrot.slane %v330_v39, 4  ;;  %v231_v11 = vrot.slane %v230_v8, 4  ;;  %v238_v12 = vrot.slane %v237_v1, 4  ;;  %v244_v16 = vsel %vm229_vm4, %v227_v4, 0.0 }
  0x1f   :  { %v334_v53 = vpop.eup %333  ;;  %v62_v54 = vadd.f32 %v328_v34, %v61_v40  ;;  %v73_v55 = vrot.slane %v332_v44, 4  ;;  %v251_v17 = vsel %vm229_vm4, %v228_v5, 0.0  ;;  %v245_v33 = vrot.slane %v244_v16, 4 }
  0x20   :  { %v68_v58 = vadd.f32 %v330_v39, %v67_v45  ;;  %v79_v59 = vrot.slane %v334_v53, 4  ;;  %v232_v21 = vadd.f32 %v231_v11, %v230_v8  ;;  %v239_v28 = vadd.f32 %v238_v12, %v237_v1 }
  0x21   :  { %v63_v62 = vrot.slane %v62_v54, 2  ;;  %v74_v63 = vadd.f32 %v332_v44, %v73_v55  ;;  %v252_v34 = vrot.slane %v251_v17, 4  ;;  %v246_v41 = vadd.f32 %v245_v33, %v244_v16 }
  0x22   :  { %v69_v6 = vrot.slane %v68_v58, 2  ;;  %v80_v0 = vadd.f32 %v334_v53, %v79_v59  ;;  %v233_v37 = vrot.slane %v232_v21, 2  ;;  %v240_v38 = vrot.slane %v239_v28, 2 }
  0x23   :  { %v64_v9 = vadd.f32 %v63_v62, %v62_v54  ;;  %v75_v10 = vrot.slane %v74_v63, 2  ;;  %v253_v42 = vadd.f32 %v252_v34, %v251_v17  ;;  %v247_v48 = vrot.slane %v246_v41, 2 }
  0x24   :  { %v70_v13 = vadd.f32 %v69_v6, %v68_v58  ;;  %v81_v15 = vrot.slane %v80_v0, 2  ;;  %v234_v44 = vadd.f32 %v233_v37, %v232_v21  ;;  %v241_v45 = vadd.f32 %v240_v38, %v239_v28 }
  0x25   :  { %v65_v18 = vrot.slane %v64_v9, 1  ;;  %v76_v19 = vadd.f32 %v75_v10, %v74_v63  ;;  %v254_v49 = vrot.slane %v253_v42, 2  ;;  %v248_v55 = vadd.f32 %v247_v48, %v246_v41 }
  0x26   :  { %v71_v29 = vrot.slane %v70_v13, 1  ;;  %v82_v32 = vadd.f32 %v81_v15, %v80_v0  ;;  %v235_v53 = vrot.slane %v234_v44, 1  ;;  %v242_v54 = vrot.slane %v241_v45, 1 }
  0x27   :  { %v66_v35 = vadd.f32 %v65_v18, %v64_v9  ;;  %v77_v36 = vrot.slane %v76_v19, 1  ;;  %v255_v56 = vadd.f32 %v254_v49, %v253_v42  ;;  %v132_v57 = vadd.f32 %v131_v23, %v456_v2 }
  0x28   :  { %v72_v39 = vadd.f32 %v71_v29, %v70_v13  ;;  %v83_v40 = vrot.slane %v82_v32, 1  ;;  %v138_v58 = vadd.f32 %v137_v25, %v458_v3  ;;  %v236_v59 = vadd.f32 %v235_v53, %v234_v44 }
  0x29   :  { %v78_v43 = vadd.f32 %v77_v36, %v76_v19  ;;  %335 = vlog2.f32 %v66_v35  ;;  %v243_v60 = vadd.f32 %v242_v54, %v241_v45  ;;  %v127_v61 = vrot.slane %v462_v22, 1 }
  0x2a   :  { %v84_v47 = vadd.f32 %v83_v40, %v82_v32  ;;  %337 = vlog2.f32 %v72_v39  ;;  %v249_v62 = vrot.slane %v248_v55, 1  ;;  %v256_v63 = vrot.slane %v255_v56, 1 }
  0x2b   :  { %339 = vlog2.f32 %v78_v43  ;;  %vm271_vm12 = vcmp.gt.s32.totalorder %v420_v30, 0  ;;  %vm272_vm13 = vcmp.gt.s32.totalorder %v422_v31, 0  ;;  %v281_v24 = vsel %vm269_vm10, %v236_v59, 0.0 }
  0x2c   :  { %341 = vlog2.f32 %v84_v47  ;;  %v282_v2 = vsel %vm270_vm11, %v243_v60, 0.0  ;;  %v250_v23 = vadd.f32 %v249_v62, %v248_v55  ;;  %v257_v4 = vadd.f32 %v256_v63, %v255_v56 }
  0x2d   :  { %v286_v3 = vsel %vm285_vm9, %v281_v24, 0.0  ;;  %v287_v25 = vsel %vm285_vm9, %v282_v2, 0.0  ;;  %v133_v5 = vrot.slane %v132_v57, 1  ;;  %v343_v6 = vmov 1966171168  }
  0x2e   :  { %v158_v0 = vunpack.c.l.s4 %v343_v6  ;;  %v288_v8 = vadd.f32 %v287_v25, %v286_v3  ;;  %v139_v1 = vrot.slane %v138_v58, 1  ;;  %v283_v14 = vsel %vm271_vm12, %v250_v23, 0.0 }
  0x2f   :  { %v284_v26 = vsel %vm272_vm13, %v257_v4, 0.0  ;;  %v145_v10 = vrot.slane %v144_v20, 1  ;;  %v289_v30 = vsel %vm285_vm9, %v283_v14, 0.0  ;;  %v128_v13 = vadd.f32 %v127_v61, %v462_v22 }
  0x30   :  { %v291_v31 = vsel %vm285_vm9, %v284_v26, 0.0  ;;  %v290_v15 = vadd.f32 %v289_v30, %v288_v8  ;;  %v134_v18 = vadd.f32 %v133_v5, %v132_v57  ;;  %v159_v19 = vunpack.c.0.s8 %v158_v0 }
  0x31   :  { %v140_v32 = vadd.f32 %v139_v1, %v138_v58  ;;  %v146_v36 = vadd.f32 %v145_v10, %v144_v20  ;;  %vm182_vm14 = vcmp.lt.s32.totalorder %v97_v7, 512 }
  0x32   :  { %v292_v33 = vadd.f32 %v291_v31, %v290_v15  ;;  %v162_v40 = vsub.s32 %v159_v19, %v412_v27 }
  0x33   :  { %v336_v9 = vpop.eup %335 }
  0x34   :  { %v338_v11 = vpop.eup %337  ;;  %v86_v12 = vmul.f32 0.6931472, %v336_v9  ;;  %293 = vadd.xlane.f32.xlu0 %v292_v33 }
  0x35   :  { %v340_v16 = vpop.eup %339  ;;  %v88_v17 = vmul.f32 0.6931472, %v338_v11 }
  0x36   :  { %v342_v21 = vpop.eup %341  ;;  %v90_v28 = vmul.f32 0.6931472, %v340_v16  ;;  %v93_v29 = vadd.f32 %v86_v12, %v427_v46 }
  0x37   :  { %v92_v34 = vmul.f32 0.6931472, %v342_v21  ;;  %v94_v35 = vadd.f32 %v88_v17, %v431_v50 }
  0x38   :  { %v95_v37 = vadd.f32 %v90_v28, %v433_v51  ;;  %v147_v38 = vsub.f32 %v93_v29, %v128_v13 }
  0x39   :  { %v96_v22 = vadd.f32 %v92_v34, %v437_v52  ;;  %v148_v39 = vsub.f32 %v94_v35, %v134_v18 }
  0x3a   :  { %v149_v41 = vsub.f32 %v95_v37, %v140_v32 }
  0x3b   :  { %v150_v42 = vsub.f32 %v96_v22, %v146_v36  ;;  %v155_v43 = vcombine.low %v147_v38, %v148_v39 }
  0x3d   :  { %v156_v44 = vcombine.low %v149_v41, %v150_v42  ;;  %v163_v46 = vrot.slane %v155_v43, %v162_v40 }
  0x3f   :  { %v170_v45 = vrot.slane %v156_v44, %v162_v40 }
  0x41   :  { %v171_v47 = vcombine.low %v163_v46, %v170_v45 }
  0x43   :  { %v178_v50 = vrot.slane %v171_v47, %v162_v40 }
  0x45   :  { %184 = vst.msk [vmem:[%s528_s2] sm:$0xf] %vm182_vm14, %v178_v50 }
  0xc1   :  { %v294_v51 = vpop.xlane.xlu0 %293 }
  0xc2   :  { %v295_v48 = vrot.slane %v294_v51, 4 }
  0xc4   :  { %v296_v52 = vadd.f32 %v295_v48, %v294_v51 }
  0xc6   :  { %v297_v49 = vrot.slane %v296_v52, 2 }
  0xc8   :  { %v298_v53 = vadd.f32 %v297_v49, %v296_v52 }
  0xca   :  { %v299_v27 = vrot.slane %v298_v53, 1 }
  0xcc   :  { %v300_v54 = vadd.f32 %v299_v27, %v298_v53 }
  0xce   :  { %324 = vpush %v300_v54 }
  0xff   :  { %s325_s9 = spop %324 }
 0x100   :  { %v302_v55 = vstv %s325_s9 }
 0x101   :  { %303 = vst [vmem:[%s529_s3] sm:$0x1] %v302_v55 }

// kernel: neg.3
= control target key start
LH: loop header
LB: loop body
LE: loop exit
PB: predicated region body
PF: predicated region fallthrough
CT: control target
= control target key end

     0   :  { %s40_s0 = inlined_call_operand.vmem [shape: f32[2,256], index: 0, kind: input, shape index: {}]   ;;  %s41_s1 = inlined_call_operand.vmem [shape: f32[2,256], index: 1, kind: output, shape index: {}]  }
   0x1   :  { %v2_v0 = vld [vmem:[%s40_s0] sm:$0x3]  ;;  %v16_v1 = vld [vmem:[%s40_s0 + $0x2] sm:$0x3] }
   0x2   :  { %v5_v2 = vxor.u32 2147483648, %v2_v0  ;;  %v12_v3 = vxor.u32 2147483648, %v16_v1 }
   0x4   :  { %7 = vst [vmem:[%s41_s1] sm:$0x3] %v5_v2  ;;  %17 = vst [vmem:[%s41_s1 + $0x2] sm:$0x3] %v12_v3 }

</bundles_post_ra>
